<compile_context>
chip_gen: v7x
topology: tpu7x:2x2x1
jax: 0.10.0
libtpu: 0.0.40
codegen_flags: <defaults>
</compile_context>

<pallas_src>
import math

import jax
import jax.numpy as jnp
from jax import lax
from jax.experimental import pallas as pl
from jax.experimental.pallas import tpu as pltpu


def _lstm_recurrence_kernel(xproj_ref, whh_ref, hs_ref, h_sc, c_sc):
    """One grid step = T_TILE time steps of the LSTM recurrence.

    xproj_ref: (T_TILE, B, 4H)  precomputed x @ W_ih^T + bias (f32)
    whh_ref:   (H, 4H)          recurrent weight, VMEM resident
    hs_ref:    (T_TILE, B, H)   hidden-state outputs for this tile
    h_sc/c_sc: (B, H)           persistent recurrent state (VMEM scratch)
    """
    @pl.when(pl.program_id(0) == 0)
    def _():
        h_sc[...] = jnp.zeros_like(h_sc)
        c_sc[...] = jnp.zeros_like(c_sc)

    H = h_sc.shape[-1]
    t_tile = xproj_ref.shape[0]
    whh = whh_ref[...]                     # load once per tile

    def step(tt, carry):
        h_prev = h_sc[...]
        c_prev = c_sc[...]
        # Only the recurrent matmul remains on the serial critical path;
        # input projection + bias were folded into xproj outside the kernel.
        gates = xproj_ref[tt] + jnp.dot(h_prev, whh,
                                        preferred_element_type=jnp.float32)
        # PyTorch gate order [i | f | g | o]. Elementwise gate math stays in
        # f32 (v5e VPU/EUP have no bf16 path; harmless on v6e/v7x).
        i_g = jax.nn.sigmoid(gates[:, 0 * H:1 * H])
        f_g = jax.nn.sigmoid(gates[:, 1 * H:2 * H])
        g_g = jnp.tanh(gates[:, 2 * H:3 * H])
        o_g = jax.nn.sigmoid(gates[:, 3 * H:4 * H])
        c_new = f_g * c_prev + i_g * g_g
        h_new = o_g * jnp.tanh(c_new)
        c_sc[...] = c_new
        h_sc[...] = h_new
        hs_ref[tt] = h_new.astype(hs_ref.dtype)
        return carry

    # Unrolled so the LLO scheduler can overlap EUP/VALU work with the next
    # step's MXU push where the data dependence allows.
    lax.fori_loop(0, t_tile, step, 0, unroll=True)


def _pick_t_tile(T, max_tile=32):
    """Largest divisor of T that is <= max_tile (keeps grid exact)."""
    for cand in range(min(T, max_tile), 0, -1):
        if T % cand == 0:
            return cand
    return 1


def lstm_forward(x, w_ih, w_hh, b_ih, b_hh, w_fc, b_fc, t_tile=None):
    """x: (B, T, D_in). Weights in PyTorch layout:
       w_ih (4H, D_in), w_hh (4H, H), b_ih/b_hh (4H,), w_fc (D_out, H), b_fc (D_out,)."""
    B, T, D_in = x.shape
    H = w_hh.shape[1]
    D_out = w_fc.shape[0]
    if t_tile is None:
        t_tile = _pick_t_tile(T)
    assert T % t_tile == 0

    f32 = jnp.float32

    # (1) Hoisted input projection: one (B*T, D_in) x (D_in, 4H) matmul,
    #     emitted directly time-major; combined bias folded in here.
    xproj = jnp.einsum('btd,gd->tbg', x.astype(f32), w_ih.astype(f32),
                       preferred_element_type=f32)
    xproj = xproj + (b_ih + b_hh).astype(f32)              # (T, B, 4H)

    # TODO(synk): at large H, cast whh_t (and xproj) to bf16 for MXU throughput
    # and v7x's 64 MiB VMEM budget; keep gate elementwise math in f32.
    whh_t = jnp.transpose(w_hh).astype(f32)                # (H, 4H)

    hs = pl.pallas_call(
        _lstm_recurrence_kernel,
        out_shape=jax.ShapeDtypeStruct((T, B, H), f32),
        grid_spec=pltpu.PrefetchScalarGridSpec(
            num_scalar_prefetch=0,
            grid=(T // t_tile,),
            in_specs=[
                pl.BlockSpec((t_tile, B, 4 * H), lambda i: (i, 0, 0)),
                pl.BlockSpec((H, 4 * H), lambda i: (0, 0)),
            ],
            out_specs=pl.BlockSpec((t_tile, B, H), lambda i: (i, 0, 0)),
            scratch_shapes=[
                pltpu.VMEM((B, H), f32),   # h state (persists across grid steps)
                pltpu.VMEM((B, H), f32),   # c state
            ],
        ),
        compiler_params=pltpu.CompilerParams(
            # The time-tile axis is a true recurrence -> sequential.
            # TODO(synk): on v7x add a leading "parallel" batch grid axis once
            # the batch is large enough for a layout-legal per-core block.
            dimension_semantics=("arbitrary",),
            vmem_limit_bytes=32 * 1024 * 1024,
        ),
    )(xproj, whh_t)                                        # (T, B, H)

    # (3) Hoisted FC head: one (T*B, H) x (H, D_out) matmul; the einsum folds
    #     the time-major -> batch_first transpose into the matmul output.
    out = jnp.einsum('tbh,dh->btd', hs, w_fc.astype(f32),
                     preferred_element_type=f32) + b_fc.astype(f32)
    return out.astype(x.dtype)                             # (B, T, D_out)


def lstm_reference(x, w_ih, w_hh, b_ih, b_hh, w_fc, b_fc):
    """Pure-JAX reference matching torch.nn.LSTM(batch_first=True) + Linear."""
    B, T, D_in = x.shape
    H = w_hh.shape[1]

    def step(carry, x_t):
        h, c = carry
        gates = x_t @ w_ih.T + h @ w_hh.T + b_ih + b_hh
        i_g = jax.nn.sigmoid(gates[:, 0 * H:1 * H])
        f_g = jax.nn.sigmoid(gates[:, 1 * H:2 * H])
        g_g = jnp.tanh(gates[:, 2 * H:3 * H])
        o_g = jax.nn.sigmoid(gates[:, 3 * H:4 * H])
        c_new = f_g * c + i_g * g_g
        h_new = o_g * jnp.tanh(c_new)
        return (h_new, c_new), h_new

    h0 = jnp.zeros((B, H), x.dtype)
    c0 = jnp.zeros((B, H), x.dtype)
    _, hs = lax.scan(step, (h0, c0), jnp.transpose(x, (1, 0, 2)))
    out = jnp.transpose(hs, (1, 0, 2))                     # (B, T, H)
    return out @ w_fc.T + b_fc


if __name__ == "__main__":
    # Small shapes consistent with the module: input_size = output_size = train_dim.
    B, T = 2, 8
    input_size, hidden_size, output_size = 4, 32, 4

    key = jax.random.PRNGKey(0)
    k = jax.random.split(key, 8)

    # Deterministic init mimicking PyTorch's U(-1/sqrt(H), 1/sqrt(H)).
    bound = 1.0 / math.sqrt(hidden_size)
    w_ih = jax.random.uniform(k[0], (4 * hidden_size, input_size),
                              jnp.float32, -bound, bound)
    w_hh = jax.random.uniform(k[1], (4 * hidden_size, hidden_size),
                              jnp.float32, -bound, bound)
    b_ih = jax.random.uniform(k[2], (4 * hidden_size,), jnp.float32, -bound, bound)
    b_hh = jax.random.uniform(k[3], (4 * hidden_size,), jnp.float32, -bound, bound)
    w_fc = jax.random.uniform(k[4], (output_size, hidden_size),
                              jnp.float32, -bound, bound)
    b_fc = jax.random.uniform(k[5], (output_size,), jnp.float32, -bound, bound)

    x = jax.random.normal(k[6], (B, T, input_size), jnp.float32)

    out = lstm_forward(x, w_ih, w_hh, b_ih, b_hh, w_fc, b_fc)
    out = jax.block_until_ready(out)

    ref = lstm_reference(x, w_ih, w_hh, b_ih, b_hh, w_fc, b_fc)
    assert out.shape == (B, T, output_size)
    assert jnp.allclose(out, ref, rtol=1e-4, atol=1e-5), "mismatch vs reference"

    print("KERNEL_OK")
</pallas_src>

<mosaic_0001>
module attributes {stable_mosaic.version = 11 : i64} {
  func.func @_lstm_recurrence_kernel(%arg0: i32, %arg1: memref<8x2x128xf32, #tpu.memory_space<vmem>>, %arg2: memref<32x128xf32, #tpu.memory_space<vmem>>, %arg3: memref<8x2x32xf32, #tpu.memory_space<vmem>>, %arg4: memref<2x32xf32, #tpu.memory_space<vmem>>, %arg5: memref<2x32xf32, #tpu.memory_space<vmem>>) attributes {dimension_semantics = [#tpu.dimension_semantics<arbitrary>], iteration_bounds = array<i64: 1>, scalar_prefetch = 0 : i64, scratch_operands = 2 : i64, tpu.core_type = #tpu.core_type<tc>, window_params = [{transform_indices = @transform_0, window_bounds = array<i64: 8, 2, 128>}, {pipeline_mode = #tpu.pipeline_mode<synchronous>, transform_indices = @transform_1, window_bounds = array<i64: 32, 128>}, {transform_indices = @transform_2, window_bounds = array<i64: 8, 2, 32>}]} {
    %c0_i32 = arith.constant 0 : i32
    %0 = arith.cmpi eq, %arg0, %c0_i32 : i32
    %1 = arith.extui %0 : i1 to i32
    %c0_i32_0 = arith.constant 0 : i32
    %2 = arith.cmpi ne, %1, %c0_i32_0 : i32
    scf.if %2 {
      %cst_130 = arith.constant 0.000000e+00 : f32
      %308 = vector.broadcast %cst_130 : f32 to vector<2x32xf32>
      %c0_131 = arith.constant 0 : index
      %c0_132 = arith.constant 0 : index
      %309 = vector.load %arg4[%c0_131, %c0_132] : memref<2x32xf32, #tpu.memory_space<vmem>>, vector<2x32xf32>
      tpu.vector_store %arg4[%c0_131, %c0_132], %308 {strides = array<i32>} : memref<2x32xf32, #tpu.memory_space<vmem>>, vector<2x32xf32>,
      %cst_133 = arith.constant 0.000000e+00 : f32
      %310 = vector.broadcast %cst_133 : f32 to vector<2x32xf32>
      %c0_134 = arith.constant 0 : index
      %c0_135 = arith.constant 0 : index
      %311 = vector.load %arg5[%c0_134, %c0_135] : memref<2x32xf32, #tpu.memory_space<vmem>>, vector<2x32xf32>
      tpu.vector_store %arg5[%c0_134, %c0_135], %310 {strides = array<i32>} : memref<2x32xf32, #tpu.memory_space<vmem>>, vector<2x32xf32>,
    } else {
    }
    %c0 = arith.constant 0 : index
    %c0_1 = arith.constant 0 : index
    %3 = vector.load %arg2[%c0, %c0_1] : memref<32x128xf32, #tpu.memory_space<vmem>>, vector<32x128xf32>
    %c0_i32_2 = arith.constant 0 : i32
    %c0_3 = arith.constant 0 : index
    %c0_4 = arith.constant 0 : index
    %4 = vector.load %arg4[%c0_3, %c0_4] : memref<2x32xf32, #tpu.memory_space<vmem>>, vector<2x32xf32>
    %c0_5 = arith.constant 0 : index
    %c0_6 = arith.constant 0 : index
    %5 = vector.load %arg5[%c0_5, %c0_6] : memref<2x32xf32, #tpu.memory_space<vmem>>, vector<2x32xf32>
    %6 = arith.index_cast %c0_i32_2 : i32 to index
    %c0_7 = arith.constant 0 : index
    %c0_8 = arith.constant 0 : index
    %7 = vector.load %arg1[%6, %c0_7, %c0_8] : memref<8x2x128xf32, #tpu.memory_space<vmem>>, vector<1x2x128xf32>
    %8 = vector.shape_cast %7 : vector<1x2x128xf32> to vector<2x128xf32>
    %cst = arith.constant dense<0.000000e+00> : vector<2x128xf32>
    %9 = tpu.matmul %4, %3, %cst {dimension_numbers = #tpu.dot_dimension_numbers<[1], [0], [0], [1], [0, 0, 1, 1], [], []>} : vector<2x32xf32>, vector<32x128xf32>, vector<2x128xf32> -> vector<2x128xf32>
    %10 = arith.addf %8, %9 : vector<2x128xf32>
    %11 = vector.extract_strided_slice %10 {offsets = [0, 0], sizes = [2, 32], strides = [1, 1]} : vector<2x128xf32> to vector<2x32xf32>
    %12 = arith.negf %11 : vector<2x32xf32>
    %13 = math.exp %12 : vector<2x32xf32>
    %cst_9 = arith.constant 1.000000e+00 : f32
    %14 = vector.broadcast %cst_9 : f32 to vector<2x32xf32>
    %15 = arith.addf %14, %13 : vector<2x32xf32>
    %16 = arith.divf %14, %15 : vector<2x32xf32>
    %17 = vector.extract_strided_slice %10 {offsets = [0, 32], sizes = [2, 32], strides = [1, 1]} : vector<2x128xf32> to vector<2x32xf32>
    %18 = arith.negf %17 : vector<2x32xf32>
    %19 = math.exp %18 : vector<2x32xf32>
    %cst_10 = arith.constant 1.000000e+00 : f32
    %20 = vector.broadcast %cst_10 : f32 to vector<2x32xf32>
    %21 = arith.addf %20, %19 : vector<2x32xf32>
    %22 = arith.divf %20, %21 : vector<2x32xf32>
    %23 = vector.extract_strided_slice %10 {offsets = [0, 64], sizes = [2, 32], strides = [1, 1]} : vector<2x128xf32> to vector<2x32xf32>
    %24 = math.tanh %23 : vector<2x32xf32>
    %25 = vector.extract_strided_slice %10 {offsets = [0, 96], sizes = [2, 32], strides = [1, 1]} : vector<2x128xf32> to vector<2x32xf32>
    %26 = arith.negf %25 : vector<2x32xf32>
    %27 = math.exp %26 : vector<2x32xf32>
    %cst_11 = arith.constant 1.000000e+00 : f32
    %28 = vector.broadcast %cst_11 : f32 to vector<2x32xf32>
    %29 = arith.addf %28, %27 : vector<2x32xf32>
    %30 = arith.divf %28, %29 : vector<2x32xf32>
    %31 = arith.mulf %22, %5 : vector<2x32xf32>
    %32 = arith.mulf %16, %24 : vector<2x32xf32>
    %33 = arith.addf %31, %32 : vector<2x32xf32>
    %34 = math.tanh %33 : vector<2x32xf32>
    %35 = arith.mulf %30, %34 : vector<2x32xf32>
    %c0_12 = arith.constant 0 : index
    %c0_13 = arith.constant 0 : index
    %36 = vector.load %arg5[%c0_12, %c0_13] : memref<2x32xf32, #tpu.memory_space<vmem>>, vector<2x32xf32>
    tpu.vector_store %arg5[%c0_12, %c0_13], %33 {strides = array<i32>} : memref<2x32xf32, #tpu.memory_space<vmem>>, vector<2x32xf32>,
    %c0_14 = arith.constant 0 : index
    %c0_15 = arith.constant 0 : index
    %37 = vector.load %arg4[%c0_14, %c0_15] : memref<2x32xf32, #tpu.memory_space<vmem>>, vector<2x32xf32>
    tpu.vector_store %arg4[%c0_14, %c0_15], %35 {strides = array<i32>} : memref<2x32xf32, #tpu.memory_space<vmem>>, vector<2x32xf32>,
    %38 = arith.index_cast %c0_i32_2 : i32 to index
    %c0_16 = arith.constant 0 : index
    %c0_17 = arith.constant 0 : index
    %39 = vector.load %arg3[%38, %c0_16, %c0_17] : memref<8x2x32xf32, #tpu.memory_space<vmem>>, vector<1x2x32xf32>
    %40 = vector.shape_cast %39 : vector<1x2x32xf32> to vector<2x32xf32>
    %41 = vector.shape_cast %35 : vector<2x32xf32> to vector<1x2x32xf32>
    tpu.vector_store %arg3[%38, %c0_16, %c0_17], %41 {strides = array<i32>} : memref<8x2x32xf32, #tpu.memory_space<vmem>>, vector<1x2x32xf32>,
    %c1_i32 = arith.constant 1 : i32
    %c0_18 = arith.constant 0 : index
    %c0_19 = arith.constant 0 : index
    %42 = vector.load %arg4[%c0_18, %c0_19] : memref<2x32xf32, #tpu.memory_space<vmem>>, vector<2x32xf32>
    %c0_20 = arith.constant 0 : index
    %c0_21 = arith.constant 0 : index
    %43 = vector.load %arg5[%c0_20, %c0_21] : memref<2x32xf32, #tpu.memory_space<vmem>>, vector<2x32xf32>
    %44 = arith.index_cast %c1_i32 : i32 to index
    %c0_22 = arith.constant 0 : index
    %c0_23 = arith.constant 0 : index
    %45 = vector.load %arg1[%44, %c0_22, %c0_23] : memref<8x2x128xf32, #tpu.memory_space<vmem>>, vector<1x2x128xf32>
    %46 = vector.shape_cast %45 : vector<1x2x128xf32> to vector<2x128xf32>
    %cst_24 = arith.constant dense<0.000000e+00> : vector<2x128xf32>
    %47 = tpu.matmul %42, %3, %cst_24 {dimension_numbers = #tpu.dot_dimension_numbers<[1], [0], [0], [1], [0, 0, 1, 1], [], []>} : vector<2x32xf32>, vector<32x128xf32>, vector<2x128xf32> -> vector<2x128xf32>
    %48 = arith.addf %46, %47 : vector<2x128xf32>
    %49 = vector.extract_strided_slice %48 {offsets = [0, 0], sizes = [2, 32], strides = [1, 1]} : vector<2x128xf32> to vector<2x32xf32>
    %50 = arith.negf %49 : vector<2x32xf32>
    %51 = math.exp %50 : vector<2x32xf32>
    %cst_25 = arith.constant 1.000000e+00 : f32
    %52 = vector.broadcast %cst_25 : f32 to vector<2x32xf32>
    %53 = arith.addf %52, %51 : vector<2x32xf32>
    %54 = arith.divf %52, %53 : vector<2x32xf32>
    %55 = vector.extract_strided_slice %48 {offsets = [0, 32], sizes = [2, 32], strides = [1, 1]} : vector<2x128xf32> to vector<2x32xf32>
    %56 = arith.negf %55 : vector<2x32xf32>
    %57 = math.exp %56 : vector<2x32xf32>
    %cst_26 = arith.constant 1.000000e+00 : f32
    %58 = vector.broadcast %cst_26 : f32 to vector<2x32xf32>
    %59 = arith.addf %58, %57 : vector<2x32xf32>
    %60 = arith.divf %58, %59 : vector<2x32xf32>
    %61 = vector.extract_strided_slice %48 {offsets = [0, 64], sizes = [2, 32], strides = [1, 1]} : vector<2x128xf32> to vector<2x32xf32>
    %62 = math.tanh %61 : vector<2x32xf32>
    %63 = vector.extract_strided_slice %48 {offsets = [0, 96], sizes = [2, 32], strides = [1, 1]} : vector<2x128xf32> to vector<2x32xf32>
    %64 = arith.negf %63 : vector<2x32xf32>
    %65 = math.exp %64 : vector<2x32xf32>
    %cst_27 = arith.constant 1.000000e+00 : f32
    %66 = vector.broadcast %cst_27 : f32 to vector<2x32xf32>
    %67 = arith.addf %66, %65 : vector<2x32xf32>
    %68 = arith.divf %66, %67 : vector<2x32xf32>
    %69 = arith.mulf %60, %43 : vector<2x32xf32>
    %70 = arith.mulf %54, %62 : vector<2x32xf32>
    %71 = arith.addf %69, %70 : vector<2x32xf32>
    %72 = math.tanh %71 : vector<2x32xf32>
    %73 = arith.mulf %68, %72 : vector<2x32xf32>
    %c0_28 = arith.constant 0 : index
    %c0_29 = arith.constant 0 : index
    %74 = vector.load %arg5[%c0_28, %c0_29] : memref<2x32xf32, #tpu.memory_space<vmem>>, vector<2x32xf32>
    tpu.vector_store %arg5[%c0_28, %c0_29], %71 {strides = array<i32>} : memref<2x32xf32, #tpu.memory_space<vmem>>, vector<2x32xf32>,
    %c0_30 = arith.constant 0 : index
    %c0_31 = arith.constant 0 : index
    %75 = vector.load %arg4[%c0_30, %c0_31] : memref<2x32xf32, #tpu.memory_space<vmem>>, vector<2x32xf32>
    tpu.vector_store %arg4[%c0_30, %c0_31], %73 {strides = array<i32>} : memref<2x32xf32, #tpu.memory_space<vmem>>, vector<2x32xf32>,
    %76 = arith.index_cast %c1_i32 : i32 to index
    %c0_32 = arith.constant 0 : index
    %c0_33 = arith.constant 0 : index
    %77 = vector.load %arg3[%76, %c0_32, %c0_33] : memref<8x2x32xf32, #tpu.memory_space<vmem>>, vector<1x2x32xf32>
    %78 = vector.shape_cast %77 : vector<1x2x32xf32> to vector<2x32xf32>
    %79 = vector.shape_cast %73 : vector<2x32xf32> to vector<1x2x32xf32>
    tpu.vector_store %arg3[%76, %c0_32, %c0_33], %79 {strides = array<i32>} : memref<8x2x32xf32, #tpu.memory_space<vmem>>, vector<1x2x32xf32>,
    %c2_i32 = arith.constant 2 : i32
    %c0_34 = arith.constant 0 : index
    %c0_35 = arith.constant 0 : index
    %80 = vector.load %arg4[%c0_34, %c0_35] : memref<2x32xf32, #tpu.memory_space<vmem>>, vector<2x32xf32>
    %c0_36 = arith.constant 0 : index
    %c0_37 = arith.constant 0 : index
    %81 = vector.load %arg5[%c0_36, %c0_37] : memref<2x32xf32, #tpu.memory_space<vmem>>, vector<2x32xf32>
    %82 = arith.index_cast %c2_i32 : i32 to index
    %c0_38 = arith.constant 0 : index
    %c0_39 = arith.constant 0 : index
    %83 = vector.load %arg1[%82, %c0_38, %c0_39] : memref<8x2x128xf32, #tpu.memory_space<vmem>>, vector<1x2x128xf32>
    %84 = vector.shape_cast %83 : vector<1x2x128xf32> to vector<2x128xf32>
    %cst_40 = arith.constant dense<0.000000e+00> : vector<2x128xf32>
    %85 = tpu.matmul %80, %3, %cst_40 {dimension_numbers = #tpu.dot_dimension_numbers<[1], [0], [0], [1], [0, 0, 1, 1], [], []>} : vector<2x32xf32>, vector<32x128xf32>, vector<2x128xf32> -> vector<2x128xf32>
    %86 = arith.addf %84, %85 : vector<2x128xf32>
    %87 = vector.extract_strided_slice %86 {offsets = [0, 0], sizes = [2, 32], strides = [1, 1]} : vector<2x128xf32> to vector<2x32xf32>
    %88 = arith.negf %87 : vector<2x32xf32>
    %89 = math.exp %88 : vector<2x32xf32>
    %cst_41 = arith.constant 1.000000e+00 : f32
    %90 = vector.broadcast %cst_41 : f32 to vector<2x32xf32>
    %91 = arith.addf %90, %89 : vector<2x32xf32>
    %92 = arith.divf %90, %91 : vector<2x32xf32>
    %93 = vector.extract_strided_slice %86 {offsets = [0, 32], sizes = [2, 32], strides = [1, 1]} : vector<2x128xf32> to vector<2x32xf32>
    %94 = arith.negf %93 : vector<2x32xf32>
    %95 = math.exp %94 : vector<2x32xf32>
    %cst_42 = arith.constant 1.000000e+00 : f32
    %96 = vector.broadcast %cst_42 : f32 to vector<2x32xf32>
    %97 = arith.addf %96, %95 : vector<2x32xf32>
    %98 = arith.divf %96, %97 : vector<2x32xf32>
    %99 = vector.extract_strided_slice %86 {offsets = [0, 64], sizes = [2, 32], strides = [1, 1]} : vector<2x128xf32> to vector<2x32xf32>
    %100 = math.tanh %99 : vector<2x32xf32>
    %101 = vector.extract_strided_slice %86 {offsets = [0, 96], sizes = [2, 32], strides = [1, 1]} : vector<2x128xf32> to vector<2x32xf32>
    %102 = arith.negf %101 : vector<2x32xf32>
    %103 = math.exp %102 : vector<2x32xf32>
    %cst_43 = arith.constant 1.000000e+00 : f32
    %104 = vector.broadcast %cst_43 : f32 to vector<2x32xf32>
    %105 = arith.addf %104, %103 : vector<2x32xf32>
    %106 = arith.divf %104, %105 : vector<2x32xf32>
    %107 = arith.mulf %98, %81 : vector<2x32xf32>
    %108 = arith.mulf %92, %100 : vector<2x32xf32>
    %109 = arith.addf %107, %108 : vector<2x32xf32>
    %110 = math.tanh %109 : vector<2x32xf32>
    %111 = arith.mulf %106, %110 : vector<2x32xf32>
    %c0_44 = arith.constant 0 : index
    %c0_45 = arith.constant 0 : index
    %112 = vector.load %arg5[%c0_44, %c0_45] : memref<2x32xf32, #tpu.memory_space<vmem>>, vector<2x32xf32>
    tpu.vector_store %arg5[%c0_44, %c0_45], %109 {strides = array<i32>} : memref<2x32xf32, #tpu.memory_space<vmem>>, vector<2x32xf32>,
    %c0_46 = arith.constant 0 : index
    %c0_47 = arith.constant 0 : index
    %113 = vector.load %arg4[%c0_46, %c0_47] : memref<2x32xf32, #tpu.memory_space<vmem>>, vector<2x32xf32>
    tpu.vector_store %arg4[%c0_46, %c0_47], %111 {strides = array<i32>} : memref<2x32xf32, #tpu.memory_space<vmem>>, vector<2x32xf32>,
    %114 = arith.index_cast %c2_i32 : i32 to index
    %c0_48 = arith.constant 0 : index
    %c0_49 = arith.constant 0 : index
    %115 = vector.load %arg3[%114, %c0_48, %c0_49] : memref<8x2x32xf32, #tpu.memory_space<vmem>>, vector<1x2x32xf32>
    %116 = vector.shape_cast %115 : vector<1x2x32xf32> to vector<2x32xf32>
    %117 = vector.shape_cast %111 : vector<2x32xf32> to vector<1x2x32xf32>
    tpu.vector_store %arg3[%114, %c0_48, %c0_49], %117 {strides = array<i32>} : memref<8x2x32xf32, #tpu.memory_space<vmem>>, vector<1x2x32xf32>,
    %c3_i32 = arith.constant 3 : i32
    %c0_50 = arith.constant 0 : index
    %c0_51 = arith.constant 0 : index
    %118 = vector.load %arg4[%c0_50, %c0_51] : memref<2x32xf32, #tpu.memory_space<vmem>>, vector<2x32xf32>
    %c0_52 = arith.constant 0 : index
    %c0_53 = arith.constant 0 : index
    %119 = vector.load %arg5[%c0_52, %c0_53] : memref<2x32xf32, #tpu.memory_space<vmem>>, vector<2x32xf32>
    %120 = arith.index_cast %c3_i32 : i32 to index
    %c0_54 = arith.constant 0 : index
    %c0_55 = arith.constant 0 : index
    %121 = vector.load %arg1[%120, %c0_54, %c0_55] : memref<8x2x128xf32, #tpu.memory_space<vmem>>, vector<1x2x128xf32>
    %122 = vector.shape_cast %121 : vector<1x2x128xf32> to vector<2x128xf32>
    %cst_56 = arith.constant dense<0.000000e+00> : vector<2x128xf32>
    %123 = tpu.matmul %118, %3, %cst_56 {dimension_numbers = #tpu.dot_dimension_numbers<[1], [0], [0], [1], [0, 0, 1, 1], [], []>} : vector<2x32xf32>, vector<32x128xf32>, vector<2x128xf32> -> vector<2x128xf32>
    %124 = arith.addf %122, %123 : vector<2x128xf32>
    %125 = vector.extract_strided_slice %124 {offsets = [0, 0], sizes = [2, 32], strides = [1, 1]} : vector<2x128xf32> to vector<2x32xf32>
    %126 = arith.negf %125 : vector<2x32xf32>
    %127 = math.exp %126 : vector<2x32xf32>
    %cst_57 = arith.constant 1.000000e+00 : f32
    %128 = vector.broadcast %cst_57 : f32 to vector<2x32xf32>
    %129 = arith.addf %128, %127 : vector<2x32xf32>
    %130 = arith.divf %128, %129 : vector<2x32xf32>
    %131 = vector.extract_strided_slice %124 {offsets = [0, 32], sizes = [2, 32], strides = [1, 1]} : vector<2x128xf32> to vector<2x32xf32>
    %132 = arith.negf %131 : vector<2x32xf32>
    %133 = math.exp %132 : vector<2x32xf32>
    %cst_58 = arith.constant 1.000000e+00 : f32
    %134 = vector.broadcast %cst_58 : f32 to vector<2x32xf32>
    %135 = arith.addf %134, %133 : vector<2x32xf32>
    %136 = arith.divf %134, %135 : vector<2x32xf32>
    %137 = vector.extract_strided_slice %124 {offsets = [0, 64], sizes = [2, 32], strides = [1, 1]} : vector<2x128xf32> to vector<2x32xf32>
    %138 = math.tanh %137 : vector<2x32xf32>
    %139 = vector.extract_strided_slice %124 {offsets = [0, 96], sizes = [2, 32], strides = [1, 1]} : vector<2x128xf32> to vector<2x32xf32>
    %140 = arith.negf %139 : vector<2x32xf32>
    %141 = math.exp %140 : vector<2x32xf32>
    %cst_59 = arith.constant 1.000000e+00 : f32
    %142 = vector.broadcast %cst_59 : f32 to vector<2x32xf32>
    %143 = arith.addf %142, %141 : vector<2x32xf32>
    %144 = arith.divf %142, %143 : vector<2x32xf32>
    %145 = arith.mulf %136, %119 : vector<2x32xf32>
    %146 = arith.mulf %130, %138 : vector<2x32xf32>
    %147 = arith.addf %145, %146 : vector<2x32xf32>
    %148 = math.tanh %147 : vector<2x32xf32>
    %149 = arith.mulf %144, %148 : vector<2x32xf32>
    %c0_60 = arith.constant 0 : index
    %c0_61 = arith.constant 0 : index
    %150 = vector.load %arg5[%c0_60, %c0_61] : memref<2x32xf32, #tpu.memory_space<vmem>>, vector<2x32xf32>
    tpu.vector_store %arg5[%c0_60, %c0_61], %147 {strides = array<i32>} : memref<2x32xf32, #tpu.memory_space<vmem>>, vector<2x32xf32>,
    %c0_62 = arith.constant 0 : index
    %c0_63 = arith.constant 0 : index
    %151 = vector.load %arg4[%c0_62, %c0_63] : memref<2x32xf32, #tpu.memory_space<vmem>>, vector<2x32xf32>
    tpu.vector_store %arg4[%c0_62, %c0_63], %149 {strides = array<i32>} : memref<2x32xf32, #tpu.memory_space<vmem>>, vector<2x32xf32>,
    %152 = arith.index_cast %c3_i32 : i32 to index
    %c0_64 = arith.constant 0 : index
    %c0_65 = arith.constant 0 : index
    %153 = vector.load %arg3[%152, %c0_64, %c0_65] : memref<8x2x32xf32, #tpu.memory_space<vmem>>, vector<1x2x32xf32>
    %154 = vector.shape_cast %153 : vector<1x2x32xf32> to vector<2x32xf32>
    %155 = vector.shape_cast %149 : vector<2x32xf32> to vector<1x2x32xf32>
    tpu.vector_store %arg3[%152, %c0_64, %c0_65], %155 {strides = array<i32>} : memref<8x2x32xf32, #tpu.memory_space<vmem>>, vector<1x2x32xf32>,
    %c4_i32 = arith.constant 4 : i32
    %c0_66 = arith.constant 0 : index
    %c0_67 = arith.constant 0 : index
    %156 = vector.load %arg4[%c0_66, %c0_67] : memref<2x32xf32, #tpu.memory_space<vmem>>, vector<2x32xf32>
    %c0_68 = arith.constant 0 : index
    %c0_69 = arith.constant 0 : index
    %157 = vector.load %arg5[%c0_68, %c0_69] : memref<2x32xf32, #tpu.memory_space<vmem>>, vector<2x32xf32>
    %158 = arith.index_cast %c4_i32 : i32 to index
    %c0_70 = arith.constant 0 : index
    %c0_71 = arith.constant 0 : index
    %159 = vector.load %arg1[%158, %c0_70, %c0_71] : memref<8x2x128xf32, #tpu.memory_space<vmem>>, vector<1x2x128xf32>
    %160 = vector.shape_cast %159 : vector<1x2x128xf32> to vector<2x128xf32>
    %cst_72 = arith.constant dense<0.000000e+00> : vector<2x128xf32>
    %161 = tpu.matmul %156, %3, %cst_72 {dimension_numbers = #tpu.dot_dimension_numbers<[1], [0], [0], [1], [0, 0, 1, 1], [], []>} : vector<2x32xf32>, vector<32x128xf32>, vector<2x128xf32> -> vector<2x128xf32>
    %162 = arith.addf %160, %161 : vector<2x128xf32>
    %163 = vector.extract_strided_slice %162 {offsets = [0, 0], sizes = [2, 32], strides = [1, 1]} : vector<2x128xf32> to vector<2x32xf32>
    %164 = arith.negf %163 : vector<2x32xf32>
    %165 = math.exp %164 : vector<2x32xf32>
    %cst_73 = arith.constant 1.000000e+00 : f32
    %166 = vector.broadcast %cst_73 : f32 to vector<2x32xf32>
    %167 = arith.addf %166, %165 : vector<2x32xf32>
    %168 = arith.divf %166, %167 : vector<2x32xf32>
    %169 = vector.extract_strided_slice %162 {offsets = [0, 32], sizes = [2, 32], strides = [1, 1]} : vector<2x128xf32> to vector<2x32xf32>
    %170 = arith.negf %169 : vector<2x32xf32>
    %171 = math.exp %170 : vector<2x32xf32>
    %cst_74 = arith.constant 1.000000e+00 : f32
    %172 = vector.broadcast %cst_74 : f32 to vector<2x32xf32>
    %173 = arith.addf %172, %171 : vector<2x32xf32>
    %174 = arith.divf %172, %173 : vector<2x32xf32>
    %175 = vector.extract_strided_slice %162 {offsets = [0, 64], sizes = [2, 32], strides = [1, 1]} : vector<2x128xf32> to vector<2x32xf32>
    %176 = math.tanh %175 : vector<2x32xf32>
    %177 = vector.extract_strided_slice %162 {offsets = [0, 96], sizes = [2, 32], strides = [1, 1]} : vector<2x128xf32> to vector<2x32xf32>
    %178 = arith.negf %177 : vector<2x32xf32>
    %179 = math.exp %178 : vector<2x32xf32>
    %cst_75 = arith.constant 1.000000e+00 : f32
    %180 = vector.broadcast %cst_75 : f32 to vector<2x32xf32>
    %181 = arith.addf %180, %179 : vector<2x32xf32>
    %182 = arith.divf %180, %181 : vector<2x32xf32>
    %183 = arith.mulf %174, %157 : vector<2x32xf32>
    %184 = arith.mulf %168, %176 : vector<2x32xf32>
    %185 = arith.addf %183, %184 : vector<2x32xf32>
    %186 = math.tanh %185 : vector<2x32xf32>
    %187 = arith.mulf %182, %186 : vector<2x32xf32>
    %c0_76 = arith.constant 0 : index
    %c0_77 = arith.constant 0 : index
    %188 = vector.load %arg5[%c0_76, %c0_77] : memref<2x32xf32, #tpu.memory_space<vmem>>, vector<2x32xf32>
    tpu.vector_store %arg5[%c0_76, %c0_77], %185 {strides = array<i32>} : memref<2x32xf32, #tpu.memory_space<vmem>>, vector<2x32xf32>,
    %c0_78 = arith.constant 0 : index
    %c0_79 = arith.constant 0 : index
    %189 = vector.load %arg4[%c0_78, %c0_79] : memref<2x32xf32, #tpu.memory_space<vmem>>, vector<2x32xf32>
    tpu.vector_store %arg4[%c0_78, %c0_79], %187 {strides = array<i32>} : memref<2x32xf32, #tpu.memory_space<vmem>>, vector<2x32xf32>,
    %190 = arith.index_cast %c4_i32 : i32 to index
    %c0_80 = arith.constant 0 : index
    %c0_81 = arith.constant 0 : index
    %191 = vector.load %arg3[%190, %c0_80, %c0_81] : memref<8x2x32xf32, #tpu.memory_space<vmem>>, vector<1x2x32xf32>
    %192 = vector.shape_cast %191 : vector<1x2x32xf32> to vector<2x32xf32>
    %193 = vector.shape_cast %187 : vector<2x32xf32> to vector<1x2x32xf32>
    tpu.vector_store %arg3[%190, %c0_80, %c0_81], %193 {strides = array<i32>} : memref<8x2x32xf32, #tpu.memory_space<vmem>>, vector<1x2x32xf32>,
    %c5_i32 = arith.constant 5 : i32
    %c0_82 = arith.constant 0 : index
    %c0_83 = arith.constant 0 : index
    %194 = vector.load %arg4[%c0_82, %c0_83] : memref<2x32xf32, #tpu.memory_space<vmem>>, vector<2x32xf32>
    %c0_84 = arith.constant 0 : index
    %c0_85 = arith.constant 0 : index
    %195 = vector.load %arg5[%c0_84, %c0_85] : memref<2x32xf32, #tpu.memory_space<vmem>>, vector<2x32xf32>
    %196 = arith.index_cast %c5_i32 : i32 to index
    %c0_86 = arith.constant 0 : index
    %c0_87 = arith.constant 0 : index
    %197 = vector.load %arg1[%196, %c0_86, %c0_87] : memref<8x2x128xf32, #tpu.memory_space<vmem>>, vector<1x2x128xf32>
    %198 = vector.shape_cast %197 : vector<1x2x128xf32> to vector<2x128xf32>
    %cst_88 = arith.constant dense<0.000000e+00> : vector<2x128xf32>
    %199 = tpu.matmul %194, %3, %cst_88 {dimension_numbers = #tpu.dot_dimension_numbers<[1], [0], [0], [1], [0, 0, 1, 1], [], []>} : vector<2x32xf32>, vector<32x128xf32>, vector<2x128xf32> -> vector<2x128xf32>
    %200 = arith.addf %198, %199 : vector<2x128xf32>
    %201 = vector.extract_strided_slice %200 {offsets = [0, 0], sizes = [2, 32], strides = [1, 1]} : vector<2x128xf32> to vector<2x32xf32>
    %202 = arith.negf %201 : vector<2x32xf32>
    %203 = math.exp %202 : vector<2x32xf32>
    %cst_89 = arith.constant 1.000000e+00 : f32
    %204 = vector.broadcast %cst_89 : f32 to vector<2x32xf32>
    %205 = arith.addf %204, %203 : vector<2x32xf32>
    %206 = arith.divf %204, %205 : vector<2x32xf32>
    %207 = vector.extract_strided_slice %200 {offsets = [0, 32], sizes = [2, 32], strides = [1, 1]} : vector<2x128xf32> to vector<2x32xf32>
    %208 = arith.negf %207 : vector<2x32xf32>
    %209 = math.exp %208 : vector<2x32xf32>
    %cst_90 = arith.constant 1.000000e+00 : f32
    %210 = vector.broadcast %cst_90 : f32 to vector<2x32xf32>
    %211 = arith.addf %210, %209 : vector<2x32xf32>
    %212 = arith.divf %210, %211 : vector<2x32xf32>
    %213 = vector.extract_strided_slice %200 {offsets = [0, 64], sizes = [2, 32], strides = [1, 1]} : vector<2x128xf32> to vector<2x32xf32>
    %214 = math.tanh %213 : vector<2x32xf32>
    %215 = vector.extract_strided_slice %200 {offsets = [0, 96], sizes = [2, 32], strides = [1, 1]} : vector<2x128xf32> to vector<2x32xf32>
    %216 = arith.negf %215 : vector<2x32xf32>
    %217 = math.exp %216 : vector<2x32xf32>
    %cst_91 = arith.constant 1.000000e+00 : f32
    %218 = vector.broadcast %cst_91 : f32 to vector<2x32xf32>
    %219 = arith.addf %218, %217 : vector<2x32xf32>
    %220 = arith.divf %218, %219 : vector<2x32xf32>
    %221 = arith.mulf %212, %195 : vector<2x32xf32>
    %222 = arith.mulf %206, %214 : vector<2x32xf32>
    %223 = arith.addf %221, %222 : vector<2x32xf32>
    %224 = math.tanh %223 : vector<2x32xf32>
    %225 = arith.mulf %220, %224 : vector<2x32xf32>
    %c0_92 = arith.constant 0 : index
    %c0_93 = arith.constant 0 : index
    %226 = vector.load %arg5[%c0_92, %c0_93] : memref<2x32xf32, #tpu.memory_space<vmem>>, vector<2x32xf32>
    tpu.vector_store %arg5[%c0_92, %c0_93], %223 {strides = array<i32>} : memref<2x32xf32, #tpu.memory_space<vmem>>, vector<2x32xf32>,
    %c0_94 = arith.constant 0 : index
    %c0_95 = arith.constant 0 : index
    %227 = vector.load %arg4[%c0_94, %c0_95] : memref<2x32xf32, #tpu.memory_space<vmem>>, vector<2x32xf32>
    tpu.vector_store %arg4[%c0_94, %c0_95], %225 {strides = array<i32>} : memref<2x32xf32, #tpu.memory_space<vmem>>, vector<2x32xf32>,
    %228 = arith.index_cast %c5_i32 : i32 to index
    %c0_96 = arith.constant 0 : index
    %c0_97 = arith.constant 0 : index
    %229 = vector.load %arg3[%228, %c0_96, %c0_97] : memref<8x2x32xf32, #tpu.memory_space<vmem>>, vector<1x2x32xf32>
    %230 = vector.shape_cast %229 : vector<1x2x32xf32> to vector<2x32xf32>
    %231 = vector.shape_cast %225 : vector<2x32xf32> to vector<1x2x32xf32>
    tpu.vector_store %arg3[%228, %c0_96, %c0_97], %231 {strides = array<i32>} : memref<8x2x32xf32, #tpu.memory_space<vmem>>, vector<1x2x32xf32>,
    %c6_i32 = arith.constant 6 : i32
    %c0_98 = arith.constant 0 : index
    %c0_99 = arith.constant 0 : index
    %232 = vector.load %arg4[%c0_98, %c0_99] : memref<2x32xf32, #tpu.memory_space<vmem>>, vector<2x32xf32>
    %c0_100 = arith.constant 0 : index
    %c0_101 = arith.constant 0 : index
    %233 = vector.load %arg5[%c0_100, %c0_101] : memref<2x32xf32, #tpu.memory_space<vmem>>, vector<2x32xf32>
    %234 = arith.index_cast %c6_i32 : i32 to index
    %c0_102 = arith.constant 0 : index
    %c0_103 = arith.constant 0 : index
    %235 = vector.load %arg1[%234, %c0_102, %c0_103] : memref<8x2x128xf32, #tpu.memory_space<vmem>>, vector<1x2x128xf32>
    %236 = vector.shape_cast %235 : vector<1x2x128xf32> to vector<2x128xf32>
    %cst_104 = arith.constant dense<0.000000e+00> : vector<2x128xf32>
    %237 = tpu.matmul %232, %3, %cst_104 {dimension_numbers = #tpu.dot_dimension_numbers<[1], [0], [0], [1], [0, 0, 1, 1], [], []>} : vector<2x32xf32>, vector<32x128xf32>, vector<2x128xf32> -> vector<2x128xf32>
    %238 = arith.addf %236, %237 : vector<2x128xf32>
    %239 = vector.extract_strided_slice %238 {offsets = [0, 0], sizes = [2, 32], strides = [1, 1]} : vector<2x128xf32> to vector<2x32xf32>
    %240 = arith.negf %239 : vector<2x32xf32>
    %241 = math.exp %240 : vector<2x32xf32>
    %cst_105 = arith.constant 1.000000e+00 : f32
    %242 = vector.broadcast %cst_105 : f32 to vector<2x32xf32>
    %243 = arith.addf %242, %241 : vector<2x32xf32>
    %244 = arith.divf %242, %243 : vector<2x32xf32>
    %245 = vector.extract_strided_slice %238 {offsets = [0, 32], sizes = [2, 32], strides = [1, 1]} : vector<2x128xf32> to vector<2x32xf32>
    %246 = arith.negf %245 : vector<2x32xf32>
    %247 = math.exp %246 : vector<2x32xf32>
    %cst_106 = arith.constant 1.000000e+00 : f32
    %248 = vector.broadcast %cst_106 : f32 to vector<2x32xf32>
    %249 = arith.addf %248, %247 : vector<2x32xf32>
    %250 = arith.divf %248, %249 : vector<2x32xf32>
    %251 = vector.extract_strided_slice %238 {offsets = [0, 64], sizes = [2, 32], strides = [1, 1]} : vector<2x128xf32> to vector<2x32xf32>
    %252 = math.tanh %251 : vector<2x32xf32>
    %253 = vector.extract_strided_slice %238 {offsets = [0, 96], sizes = [2, 32], strides = [1, 1]} : vector<2x128xf32> to vector<2x32xf32>
    %254 = arith.negf %253 : vector<2x32xf32>
    %255 = math.exp %254 : vector<2x32xf32>
    %cst_107 = arith.constant 1.000000e+00 : f32
    %256 = vector.broadcast %cst_107 : f32 to vector<2x32xf32>
    %257 = arith.addf %256, %255 : vector<2x32xf32>
    %258 = arith.divf %256, %257 : vector<2x32xf32>
    %259 = arith.mulf %250, %233 : vector<2x32xf32>
    %260 = arith.mulf %244, %252 : vector<2x32xf32>
    %261 = arith.addf %259, %260 : vector<2x32xf32>
    %262 = math.tanh %261 : vector<2x32xf32>
    %263 = arith.mulf %258, %262 : vector<2x32xf32>
    %c0_108 = arith.constant 0 : index
    %c0_109 = arith.constant 0 : index
    %264 = vector.load %arg5[%c0_108, %c0_109] : memref<2x32xf32, #tpu.memory_space<vmem>>, vector<2x32xf32>
    tpu.vector_store %arg5[%c0_108, %c0_109], %261 {strides = array<i32>} : memref<2x32xf32, #tpu.memory_space<vmem>>, vector<2x32xf32>,
    %c0_110 = arith.constant 0 : index
    %c0_111 = arith.constant 0 : index
    %265 = vector.load %arg4[%c0_110, %c0_111] : memref<2x32xf32, #tpu.memory_space<vmem>>, vector<2x32xf32>
    tpu.vector_store %arg4[%c0_110, %c0_111], %263 {strides = array<i32>} : memref<2x32xf32, #tpu.memory_space<vmem>>, vector<2x32xf32>,
    %266 = arith.index_cast %c6_i32 : i32 to index
    %c0_112 = arith.constant 0 : index
    %c0_113 = arith.constant 0 : index
    %267 = vector.load %arg3[%266, %c0_112, %c0_113] : memref<8x2x32xf32, #tpu.memory_space<vmem>>, vector<1x2x32xf32>
    %268 = vector.shape_cast %267 : vector<1x2x32xf32> to vector<2x32xf32>
    %269 = vector.shape_cast %263 : vector<2x32xf32> to vector<1x2x32xf32>
    tpu.vector_store %arg3[%266, %c0_112, %c0_113], %269 {strides = array<i32>} : memref<8x2x32xf32, #tpu.memory_space<vmem>>, vector<1x2x32xf32>,
    %c7_i32 = arith.constant 7 : i32
    %c0_114 = arith.constant 0 : index
    %c0_115 = arith.constant 0 : index
    %270 = vector.load %arg4[%c0_114, %c0_115] : memref<2x32xf32, #tpu.memory_space<vmem>>, vector<2x32xf32>
    %c0_116 = arith.constant 0 : index
    %c0_117 = arith.constant 0 : index
    %271 = vector.load %arg5[%c0_116, %c0_117] : memref<2x32xf32, #tpu.memory_space<vmem>>, vector<2x32xf32>
    %272 = arith.index_cast %c7_i32 : i32 to index
    %c0_118 = arith.constant 0 : index
    %c0_119 = arith.constant 0 : index
    %273 = vector.load %arg1[%272, %c0_118, %c0_119] : memref<8x2x128xf32, #tpu.memory_space<vmem>>, vector<1x2x128xf32>
    %274 = vector.shape_cast %273 : vector<1x2x128xf32> to vector<2x128xf32>
    %cst_120 = arith.constant dense<0.000000e+00> : vector<2x128xf32>
    %275 = tpu.matmul %270, %3, %cst_120 {dimension_numbers = #tpu.dot_dimension_numbers<[1], [0], [0], [1], [0, 0, 1, 1], [], []>} : vector<2x32xf32>, vector<32x128xf32>, vector<2x128xf32> -> vector<2x128xf32>
    %276 = arith.addf %274, %275 : vector<2x128xf32>
    %277 = vector.extract_strided_slice %276 {offsets = [0, 0], sizes = [2, 32], strides = [1, 1]} : vector<2x128xf32> to vector<2x32xf32>
    %278 = arith.negf %277 : vector<2x32xf32>
    %279 = math.exp %278 : vector<2x32xf32>
    %cst_121 = arith.constant 1.000000e+00 : f32
    %280 = vector.broadcast %cst_121 : f32 to vector<2x32xf32>
    %281 = arith.addf %280, %279 : vector<2x32xf32>
    %282 = arith.divf %280, %281 : vector<2x32xf32>
    %283 = vector.extract_strided_slice %276 {offsets = [0, 32], sizes = [2, 32], strides = [1, 1]} : vector<2x128xf32> to vector<2x32xf32>
    %284 = arith.negf %283 : vector<2x32xf32>
    %285 = math.exp %284 : vector<2x32xf32>
    %cst_122 = arith.constant 1.000000e+00 : f32
    %286 = vector.broadcast %cst_122 : f32 to vector<2x32xf32>
    %287 = arith.addf %286, %285 : vector<2x32xf32>
    %288 = arith.divf %286, %287 : vector<2x32xf32>
    %289 = vector.extract_strided_slice %276 {offsets = [0, 64], sizes = [2, 32], strides = [1, 1]} : vector<2x128xf32> to vector<2x32xf32>
    %290 = math.tanh %289 : vector<2x32xf32>
    %291 = vector.extract_strided_slice %276 {offsets = [0, 96], sizes = [2, 32], strides = [1, 1]} : vector<2x128xf32> to vector<2x32xf32>
    %292 = arith.negf %291 : vector<2x32xf32>
    %293 = math.exp %292 : vector<2x32xf32>
    %cst_123 = arith.constant 1.000000e+00 : f32
    %294 = vector.broadcast %cst_123 : f32 to vector<2x32xf32>
    %295 = arith.addf %294, %293 : vector<2x32xf32>
    %296 = arith.divf %294, %295 : vector<2x32xf32>
    %297 = arith.mulf %288, %271 : vector<2x32xf32>
    %298 = arith.mulf %282, %290 : vector<2x32xf32>
    %299 = arith.addf %297, %298 : vector<2x32xf32>
    %300 = math.tanh %299 : vector<2x32xf32>
    %301 = arith.mulf %296, %300 : vector<2x32xf32>
    %c0_124 = arith.constant 0 : index
    %c0_125 = arith.constant 0 : index
    %302 = vector.load %arg5[%c0_124, %c0_125] : memref<2x32xf32, #tpu.memory_space<vmem>>, vector<2x32xf32>
    tpu.vector_store %arg5[%c0_124, %c0_125], %299 {strides = array<i32>} : memref<2x32xf32, #tpu.memory_space<vmem>>, vector<2x32xf32>,
    %c0_126 = arith.constant 0 : index
    %c0_127 = arith.constant 0 : index
    %303 = vector.load %arg4[%c0_126, %c0_127] : memref<2x32xf32, #tpu.memory_space<vmem>>, vector<2x32xf32>
    tpu.vector_store %arg4[%c0_126, %c0_127], %301 {strides = array<i32>} : memref<2x32xf32, #tpu.memory_space<vmem>>, vector<2x32xf32>,
    %304 = arith.index_cast %c7_i32 : i32 to index
    %c0_128 = arith.constant 0 : index
    %c0_129 = arith.constant 0 : index
    %305 = vector.load %arg3[%304, %c0_128, %c0_129] : memref<8x2x32xf32, #tpu.memory_space<vmem>>, vector<1x2x32xf32>
    %306 = vector.shape_cast %305 : vector<1x2x32xf32> to vector<2x32xf32>
    %307 = vector.shape_cast %301 : vector<2x32xf32> to vector<1x2x32xf32>
    tpu.vector_store %arg3[%304, %c0_128, %c0_129], %307 {strides = array<i32>} : memref<8x2x32xf32, #tpu.memory_space<vmem>>, vector<1x2x32xf32>,
    %c8_i32 = arith.constant 8 : i32
    return
  }
  func.func @transform_0(%arg0: i32) -> (i32, i32, i32) {
    %c0_i32 = arith.constant 0 : i32
    %c0_i32_0 = arith.constant 0 : i32
    %c0_i32_1 = arith.constant 0 : i32
    return %arg0, %c0_i32, %c0_i32_0 : i32, i32, i32
  }
  func.func @transform_1(%arg0: i32) -> (i32, i32) {
    %c0_i32 = arith.constant 0 : i32
    %c0_i32_0 = arith.constant 0 : i32
    %c0_i32_1 = arith.constant 0 : i32
    return %c0_i32, %c0_i32_0 : i32, i32
  }
  func.func @transform_2(%arg0: i32) -> (i32, i32, i32) {
    %c0_i32 = arith.constant 0 : i32
    %c0_i32_0 = arith.constant 0 : i32
    %c0_i32_1 = arith.constant 0 : i32
    return %arg0, %c0_i32, %c0_i32_0 : i32, i32, i32
  }
}

</mosaic_0001>

<bundles_post_ra>
// kernel: tpu_custom_call.1
= control target key start
LH: loop header
LB: loop body
LE: loop exit
PB: predicated region body
PF: predicated region fallthrough
CT: control target
= control target key end

     0   :  { %7 = vsyncpa [#allocation5], 0  ;;  %s1558_s0 = inlined_call_operand.hbm [shape: f32[8,2,128], index: 0, kind: input, shape index: {}]   ;;  %s1559_s1 = inlined_call_operand.hbm [shape: f32[32,128], index: 1, kind: input, shape index: {}]   ;;  %s1560_s2 = inlined_call_operand.hbm [shape: f32[8,2,32], index: 2, kind: output, shape index: {}]  }
   0x1   :  { %8 = vsyncpa [#allocation8], 0 }
   0x2   :  { %9 = vsyncpa [#allocation6], 0  ;;  %s1353_s9 = smov [#allocation4]   ;;  %s1281_s13 = scalar_lea.hbm %s1558_s0, 256 }
   0x3   :  { %s15_s10 = sshll.u32 %s1353_s9, 4  ;;  %p1282_p0 = scmp.ne.s32.totalorder %s1558_s0, %s1281_s13  ;;  %s16_s10 = int_to_ptr.vmem [resolvable:$true] %s15_s10 }
   0x4   :  { %p1285_p1 = scmp.lt.u32.totalorder %s1281_s13, %s1558_s0 }
   0x6   :  { %p1287_p2 = pnand %p1285_p1, %p1282_p0 }
   0x8   :  { %1290 = shalt.err (!%p1287_p2)
}
   0x9   :  { %s1291_s18 = scalar_lea.vmem %s16_s10, 256  ;;  %p1296_p4 = scmp.lt.s32.totalorder %s16_s10, %s16_s10 }
   0xa   :  { %p1292_p3 = scmp.ne.s32.totalorder %s16_s10, %s1291_s18  ;;  %p1297_p5 = scmp.lt.s32.totalorder %s1291_s18, %s1291_s18 }
   0xc   :  { %p1298_p6 = por %p1297_p5, %p1296_p4 }
   0xe   :  { %p1299_p7 = pnand %p1298_p6, %p1292_p3 }
  0x10   :  { %1302 = shalt.err (!%p1299_p7)
}
  0x11   :  { %s1354_s19 = smov 32   ;;  %s1355_s20 = smov 2  }
  0x12   :  { %21 = dma.hbm_to_vmem [thread:$0]  %s1558_s0, 256, %s16_s10, [#allocation5], %s1354_s19, %s1354_s19, %s1355_s20  }
  0x13   :  { %s1356_s23 = smov [#allocation7]   ;;  %s1303_s27 = scalar_lea.hbm %s1559_s1, 512 }
  0x14   :  { %s27_s24 = sshll.u32 %s1356_s23, 4  ;;  %p1304_p8 = scmp.ne.s32.totalorder %s1559_s1, %s1303_s27  ;;  %s28_s24 = int_to_ptr.vmem [resolvable:$true] %s27_s24 }
  0x15   :  { %p1307_p9 = scmp.lt.u32.totalorder %s1303_s27, %s1559_s1 }
  0x17   :  { %p1309_p10 = pnand %p1307_p9, %p1304_p8 }
  0x19   :  { %1312 = shalt.err (!%p1309_p10)
}
  0x1a   :  { %s1313_s4 = scalar_lea.vmem %s28_s24, 512  ;;  %p1318_p12 = scmp.lt.s32.totalorder %s28_s24, %s28_s24 }
  0x1b   :  { %p1314_p11 = scmp.ne.s32.totalorder %s28_s24, %s1313_s4  ;;  %p1319_p13 = scmp.lt.s32.totalorder %s1313_s4, %s1313_s4 }
  0x1d   :  { %p1320_p0 = por %p1319_p13, %p1318_p12 }
  0x1f   :  { %p1321_p1 = pnand %p1320_p0, %p1314_p11 }
  0x21   :  { %1324 = shalt.err (!%p1321_p1)
}
  0x22   :  { %s1357_s0 = smov 128   ;;  %s1358_s5 = smov 8  }
  0x23   :  { %33 = dma.hbm_to_vmem [thread:$0]  %s1559_s1, 512, %s28_s24, [#allocation8], %s1357_s0, %s1357_s0, %s1358_s5  }
  0x24   :  { %1347 = dma.done.wait [#allocation5], 256  }
  0x25   :  { %1348 = vsyncadd [#allocation5], 4294967040 }
  0x26   :  { %1349 = dma.done.wait [#allocation8], 512  }
  0x27   :  { %1350 = vsyncadd [#allocation8], 4294966784  ;;  %vm44_vm0 = vcmask 254976   ;;  %v1359_v0 = vmov 0.0|0.0   ;;  %v1360_v1 = vmov 0.0   ;;  %vm1361_vm1 = vmmov 0  }
  0x28   :  { %1157 = vmatprep.subr.bf16.mxu0 %v1359_v0  ;;  %45 = vst.msk [vmem:[#allocation2] sm:$0x3] %vm44_vm0, %v1360_v1  ;;  %46 = vst.msk [vmem:[#allocation3] sm:$0x3] %vm44_vm0, %v1360_v1  ;;  %1077 = vmatprep.mubr.msk.f32.mxu0 %vm1361_vm1, %v1360_v1  ;;  %v47_v2 = vld [vmem:[#allocation7] sm:$0xff]  ;;  %v48_v3 = vld [vmem:[#allocation7 + $0x8] sm:$0xff] }
  0x29   :  { %1163 = vmatprep.subr.bf16.mxu1 %v1359_v0  ;;  %1088 = vmatprep.mubr.msk.f32.mxu1 %vm1361_vm1, %v1360_v1  ;;  %v49_v4 = vld [vmem:[#allocation7 + $0x10] sm:$0xff]  ;;  %v1417_v5 = vpack.c.bf16 %v48_v3, %v47_v2  ;;  %v50_v6 = vld [vmem:[#allocation7 + $0x18] sm:$0xff]  ;;  %vm54_vm2 = vcmask 261120   ;;  %s1362_s1 = smov 64   ;;  %s1363_s8 = smov 96  }
  0x2a   :  { %v1420_v7 = vpack.c.bf16 %v50_v6, %v49_v4  ;;  %v53_v9 = vld [vmem:[#allocation4] sm:$0x3]  ;;  %v172_v32 = vld [vmem:[#allocation4 + $0x2] sm:$0x3]  ;;  %v290_v54 = vld [vmem:[#allocation4 + $0x4] sm:$0x3] }
  0x2b   :  { %1159 = vmatpush3.bf16.msra.mxu0 %v1417_v5  ;;  %1165 = vmatpush3.bf16.msra.mxu1 %v1417_v5  ;;  %s1364_s9 = smov [#allocation9]  }
  0x2c   :  { %1160 = vmatprep.subr.bf16.mxu0 %v1359_v0  ;;  %1166 = vmatprep.subr.bf16.mxu1 %v1359_v0  ;;  %s1000_s10 = sshll.u32 %s1364_s9, 4  ;;  %s1001_s10 = int_to_ptr.vmem [resolvable:$true] %s1000_s10 }
  0x2d   :  { %s1325_s11 = scalar_lea.vmem %s1001_s10, 256  ;;  %p1330_p3 = scmp.lt.s32.totalorder %s1001_s10, %s1001_s10 }
  0x2e   :  { %p1326_p2 = scmp.ne.s32.totalorder %s1001_s10, %s1325_s11  ;;  %p1331_p4 = scmp.lt.s32.totalorder %s1325_s11, %s1325_s11 }
  0x2f   :  { %1162 = vmatpush3.bf16.msra.mxu0 %v1420_v7  ;;  %v51_v8 = vld [vmem:[#allocation2] sm:$0x3]  ;;  %1168 = vmatpush3.bf16.msra.mxu1 %v1420_v7  ;;  %v52_v14 = vld [vmem:[#allocation3] sm:$0x3] }
  0x30   :  { %1169 = vmatprep.subr.bf16.mxu0 %v1359_v0  ;;  %1175 = vmatprep.subr.bf16.mxu1 %v1359_v0  ;;  %p1332_p5 = por %p1331_p4, %p1330_p3 }
  0x32   :  { %1078 = vmatmul.mubr.msk.f32.vlgmr.msra.gmra.mrb[0].mxu0 %vm54_vm2, %v51_v8  ;;  %p1333_p6 = pnand %p1332_p5, %p1326_p2 }
  0x33   :  { %1171 = vmatpush3.bf16.msra.mxu0 %v1417_v5  ;;  %1099 = vmatprep.mubr.msk.f32.mxu0 %vm1361_vm1, %v1360_v1 }
  0x34   :  { %1172 = vmatprep.subr.bf16.mxu0 %v1359_v0 }
  0x37   :  { %1174 = vmatpush3.bf16.msra.mxu0 %v1420_v7 }
  0x38   :  { %1181 = vmatprep.subr.bf16.mxu0 %v1359_v0 }
 0x105   :  { %v124_v10 = vpop.f32.mrb[0].mxu0 }
 0x106   :  { %v128_v11 = vadd.f32 %v124_v10, %v53_v9  ;;  %v1079_v12 = vpop.f32.mrb[1].mxu0 }
 0x108   :  { %1217 = vtanh.f32 %v128_v11  ;;  %v1014_v15 = vmul.f32 -1.442695, %v128_v11 }
 0x10a   :  { %1219 = vpow2.f32 %v1014_v15 }
 0x112   :  { %v1218_v13 = vpop.eup %1217 }
 0x113   :  { %142 = vrot.lane.b32.xlu0 %v1218_v13, %s1362_s1 }
 0x114   :  { %v1220_v16 = vpop.eup %1219 }
 0x115   :  { %v132_v17 = vadd.f32 1.0, %v1220_v16  ;;  %v408_v16 = vld [vmem:[#allocation4 + $0x6] sm:$0x3] }
 0x117   :  { %137 = vrot.lane.b32.xlu0 %v52_v14, %s1354_s19  ;;  %1221 = vrcp.f32 %v132_v17 }
 0x121   :  { %v1222_v18 = vpop.eup %1221 }
 0x185   :  { %v143_v19 = vpop.permute.xlu0 %142 }
 0x186   :  { %v145_v20 = vmul.f32 %v1222_v18, %v143_v19 }
 0x188   :  { %147 = vrot.lane.b32.xlu1 %v145_v20, %s1354_s19 }
 0x189   :  { %v138_v21 = vpop.permute.xlu0 %137 }
 0x18a   :  { %v140_v22 = vmul.f32 %v1222_v18, %v138_v21 }
 0x1fa   :  { %v148_v23 = vpop.permute.xlu1 %147 }
 0x1fb   :  { %v150_v24 = vadd.f32 %v148_v23, %v140_v22 }
 0x1fd   :  { %1223 = vtanh.f32 %v150_v24 }
 0x207   :  { %v1224_v25 = vpop.eup %1223 }
 0x208   :  { %153 = vrot.lane.b32.xlu1 %v1224_v25, %s1362_s1 }
 0x20c   :  { %158 = vrot.lane.b32.xlu1 %v150_v24, %s1363_s8 }
 0x27a   :  { %v154_v26 = vpop.permute.xlu1 %153 }
 0x27b   :  { %v156_v27 = vmul.f32 %v1222_v18, %v154_v26 }
 0x27d   :  { %164 = vrot.lane.b32.xlu0 %v156_v27, %s1354_s19 }
 0x27e   :  { %v159_v28 = vpop.permute.xlu1 %158 }
 0x27f   :  { %162 = vst.msk [vmem:[#allocation3] sm:$0x3] %vm44_vm0, %v159_v28 }
 0x286   :  { %v170_v29 = vld [vmem:[#allocation3] sm:$0x3] }
 0x287   :  { %255 = vrot.lane.b32.xlu1 %v170_v29, %s1354_s19 }
 0x2ef   :  { %v165_v30 = vpop.permute.xlu0 %164 }
 0x2f0   :  { %167 = vst.msk [vmem:[#allocation2] sm:$0x3] %vm44_vm0, %v165_v30  ;;  %168 = vst.msk [vmem:[#allocation9] sm:$0x3] %vm44_vm0, %v165_v30 }
 0x2f7   :  { %v169_v31 = vld [vmem:[#allocation2] sm:$0x3] }
 0x2f8   :  { %1089 = vmatmul.mubr.msk.f32.vlgmr.msra.gmra.mrb[0].mxu1 %vm54_vm2, %v169_v31 }
 0x2f9   :  { %1177 = vmatpush3.bf16.msra.mxu1 %v1417_v5  ;;  %1110 = vmatprep.mubr.msk.f32.mxu1 %vm1361_vm1, %v1360_v1  ;;  %v256_v43 = vpop.permute.xlu1 %255 }
 0x2fa   :  { %1178 = vmatprep.subr.bf16.mxu1 %v1359_v0 }
 0x2fd   :  { %1180 = vmatpush3.bf16.msra.mxu1 %v1420_v7 }
 0x2fe   :  { %1187 = vmatprep.subr.bf16.mxu1 %v1359_v0 }
 0x3cb   :  { %v242_v33 = vpop.f32.mrb[0].mxu1 }
 0x3cc   :  { %v246_v34 = vadd.f32 %v242_v33, %v172_v32  ;;  %v1090_v35 = vpop.f32.mrb[1].mxu1 }
 0x3ce   :  { %1225 = vtanh.f32 %v246_v34  ;;  %v1016_v37 = vmul.f32 -1.442695, %v246_v34 }
 0x3d0   :  { %1227 = vpow2.f32 %v1016_v37 }
 0x3d8   :  { %v1226_v36 = vpop.eup %1225 }
 0x3d9   :  { %260 = vrot.lane.b32.xlu0 %v1226_v36, %s1362_s1 }
 0x3da   :  { %v1228_v38 = vpop.eup %1227 }
 0x3db   :  { %v250_v39 = vadd.f32 1.0, %v1228_v38  ;;  %v526_v38 = vld [vmem:[#allocation4 + $0x8] sm:$0x3] }
 0x3dd   :  { %1229 = vrcp.f32 %v250_v39 }
 0x3e7   :  { %v1230_v40 = vpop.eup %1229 }
 0x3e8   :  { %v258_v44 = vmul.f32 %v1230_v40, %v256_v43 }
 0x44b   :  { %v261_v41 = vpop.permute.xlu0 %260 }
 0x44c   :  { %v263_v42 = vmul.f32 %v1230_v40, %v261_v41 }
 0x44e   :  { %265 = vrot.lane.b32.xlu0 %v263_v42, %s1354_s19 }
 0x4c0   :  { %v266_v45 = vpop.permute.xlu0 %265 }
 0x4c1   :  { %v268_v46 = vadd.f32 %v266_v45, %v258_v44 }
 0x4c3   :  { %1231 = vtanh.f32 %v268_v46 }
 0x4cd   :  { %v1232_v47 = vpop.eup %1231 }
 0x4ce   :  { %271 = vrot.lane.b32.xlu1 %v1232_v47, %s1362_s1 }
 0x4d2   :  { %276 = vrot.lane.b32.xlu1 %v268_v46, %s1363_s8 }
 0x540   :  { %v272_v48 = vpop.permute.xlu1 %271 }
 0x541   :  { %v274_v49 = vmul.f32 %v1230_v40, %v272_v48 }
 0x543   :  { %281 = vrot.lane.b32.xlu0 %v274_v49, %s1354_s19 }
 0x544   :  { %v277_v50 = vpop.permute.xlu1 %276 }
 0x545   :  { %279 = vst.msk [vmem:[#allocation3] sm:$0x3] %vm44_vm0, %v277_v50 }
 0x54c   :  { %v288_v51 = vld [vmem:[#allocation3] sm:$0x3] }
 0x54d   :  { %373 = vrot.lane.b32.xlu1 %v288_v51, %s1354_s19 }
 0x5b5   :  { %v282_v52 = vpop.permute.xlu0 %281 }
 0x5b6   :  { %284 = vst.msk [vmem:[#allocation2] sm:$0x3] %vm44_vm0, %v282_v52  ;;  %286 = vst.msk [vmem:[#allocation9 + $0x2] sm:$0x3] %vm44_vm0, %v282_v52 }
 0x5bd   :  { %v287_v53 = vld [vmem:[#allocation2] sm:$0x3] }
 0x5be   :  { %1100 = vmatmul.mubr.msk.f32.vlgmr.msra.gmra.mrb[2].mxu0 %vm54_vm2, %v287_v53 }
 0x5bf   :  { %1183 = vmatpush3.bf16.msra.mxu0 %v1417_v5  ;;  %1121 = vmatprep.mubr.msk.f32.mxu0 %vm1361_vm1, %v1360_v1  ;;  %v374_v3 = vpop.permute.xlu1 %373 }
 0x5c0   :  { %1184 = vmatprep.subr.bf16.mxu0 %v1359_v0 }
 0x5c3   :  { %1186 = vmatpush3.bf16.msra.mxu0 %v1420_v7 }
 0x5c4   :  { %1193 = vmatprep.subr.bf16.mxu0 %v1359_v0 }
 0x691   :  { %v360_v55 = vpop.f32.mrb[2].mxu0 }
 0x692   :  { %v364_v56 = vadd.f32 %v360_v55, %v290_v54  ;;  %v1101_v57 = vpop.f32.mrb[3].mxu0 }
 0x694   :  { %1233 = vtanh.f32 %v364_v56  ;;  %v1018_v59 = vmul.f32 -1.442695, %v364_v56 }
 0x696   :  { %1235 = vpow2.f32 %v1018_v59 }
 0x69e   :  { %v1234_v58 = vpop.eup %1233 }
 0x69f   :  { %378 = vrot.lane.b32.xlu0 %v1234_v58, %s1362_s1 }
 0x6a0   :  { %v1236_v60 = vpop.eup %1235 }
 0x6a1   :  { %v368_v61 = vadd.f32 1.0, %v1236_v60  ;;  %v644_v60 = vld [vmem:[#allocation4 + $0xa] sm:$0x3] }
 0x6a3   :  { %1237 = vrcp.f32 %v368_v61 }
 0x6ad   :  { %v1238_v62 = vpop.eup %1237 }
 0x6ae   :  { %v376_v4 = vmul.f32 %v1238_v62, %v374_v3 }
 0x711   :  { %v379_v63 = vpop.permute.xlu0 %378 }
 0x712   :  { %v381_v2 = vmul.f32 %v1238_v62, %v379_v63 }
 0x714   :  { %383 = vrot.lane.b32.xlu0 %v381_v2, %s1354_s19 }
 0x786   :  { %v384_v6 = vpop.permute.xlu0 %383 }
 0x787   :  { %v386_v8 = vadd.f32 %v384_v6, %v376_v4 }
 0x789   :  { %1239 = vtanh.f32 %v386_v8 }
 0x793   :  { %v1240_v9 = vpop.eup %1239 }
 0x794   :  { %389 = vrot.lane.b32.xlu1 %v1240_v9, %s1362_s1 }
 0x798   :  { %394 = vrot.lane.b32.xlu1 %v386_v8, %s1363_s8 }
 0x806   :  { %v390_v10 = vpop.permute.xlu1 %389 }
 0x807   :  { %v392_v11 = vmul.f32 %v1238_v62, %v390_v10 }
 0x809   :  { %399 = vrot.lane.b32.xlu0 %v392_v11, %s1354_s19 }
 0x80a   :  { %v395_v12 = vpop.permute.xlu1 %394 }
 0x80b   :  { %397 = vst.msk [vmem:[#allocation3] sm:$0x3] %vm44_vm0, %v395_v12 }
 0x812   :  { %v406_v13 = vld [vmem:[#allocation3] sm:$0x3] }
 0x813   :  { %491 = vrot.lane.b32.xlu1 %v406_v13, %s1354_s19 }
 0x87b   :  { %v400_v14 = vpop.permute.xlu0 %399 }
 0x87c   :  { %402 = vst.msk [vmem:[#allocation2] sm:$0x3] %vm44_vm0, %v400_v14  ;;  %404 = vst.msk [vmem:[#allocation9 + $0x4] sm:$0x3] %vm44_vm0, %v400_v14 }
 0x883   :  { %v405_v15 = vld [vmem:[#allocation2] sm:$0x3] }
 0x884   :  { %1111 = vmatmul.mubr.msk.f32.vlgmr.msra.gmra.mrb[2].mxu1 %vm54_vm2, %v405_v15 }
 0x885   :  { %1189 = vmatpush3.bf16.msra.mxu1 %v1417_v5  ;;  %1132 = vmatprep.mubr.msk.f32.mxu1 %vm1361_vm1, %v1360_v1  ;;  %v492_v27 = vpop.permute.xlu1 %491 }
 0x886   :  { %1190 = vmatprep.subr.bf16.mxu1 %v1359_v0 }
 0x889   :  { %1192 = vmatpush3.bf16.msra.mxu1 %v1420_v7 }
 0x88a   :  { %1199 = vmatprep.subr.bf16.mxu1 %v1359_v0 }
 0x957   :  { %v478_v17 = vpop.f32.mrb[2].mxu1 }
 0x958   :  { %v482_v18 = vadd.f32 %v478_v17, %v408_v16  ;;  %v1112_v19 = vpop.f32.mrb[3].mxu1 }
 0x95a   :  { %1241 = vtanh.f32 %v482_v18  ;;  %v1020_v21 = vmul.f32 -1.442695, %v482_v18  ;;  %v762_v18 = vld [vmem:[#allocation4 + $0xc] sm:$0x3] }
 0x95c   :  { %1243 = vpow2.f32 %v1020_v21 }
 0x964   :  { %v1242_v20 = vpop.eup %1241 }
 0x965   :  { %496 = vrot.lane.b32.xlu0 %v1242_v20, %s1362_s1 }
 0x966   :  { %v1244_v22 = vpop.eup %1243 }
 0x967   :  { %v486_v23 = vadd.f32 1.0, %v1244_v22 }
 0x969   :  { %1245 = vrcp.f32 %v486_v23 }
 0x973   :  { %v1246_v24 = vpop.eup %1245 }
 0x974   :  { %v494_v28 = vmul.f32 %v1246_v24, %v492_v27 }
 0x9d7   :  { %v497_v25 = vpop.permute.xlu0 %496 }
 0x9d8   :  { %v499_v26 = vmul.f32 %v1246_v24, %v497_v25 }
 0x9da   :  { %501 = vrot.lane.b32.xlu0 %v499_v26, %s1354_s19 }
 0xa4c   :  { %v502_v29 = vpop.permute.xlu0 %501 }
 0xa4d   :  { %v504_v30 = vadd.f32 %v502_v29, %v494_v28 }
 0xa4f   :  { %1247 = vtanh.f32 %v504_v30 }
 0xa59   :  { %v1248_v31 = vpop.eup %1247 }
 0xa5a   :  { %507 = vrot.lane.b32.xlu1 %v1248_v31, %s1362_s1 }
 0xa5e   :  { %512 = vrot.lane.b32.xlu1 %v504_v30, %s1363_s8 }
 0xacc   :  { %v508_v32 = vpop.permute.xlu1 %507 }
 0xacd   :  { %v510_v33 = vmul.f32 %v1246_v24, %v508_v32 }
 0xacf   :  { %517 = vrot.lane.b32.xlu0 %v510_v33, %s1354_s19 }
 0xad0   :  { %v513_v34 = vpop.permute.xlu1 %512 }
 0xad1   :  { %515 = vst.msk [vmem:[#allocation3] sm:$0x3] %vm44_vm0, %v513_v34 }
 0xad8   :  { %v524_v35 = vld [vmem:[#allocation3] sm:$0x3] }
 0xad9   :  { %609 = vrot.lane.b32.xlu1 %v524_v35, %s1354_s19 }
 0xb41   :  { %v518_v36 = vpop.permute.xlu0 %517 }
 0xb42   :  { %520 = vst.msk [vmem:[#allocation2] sm:$0x3] %vm44_vm0, %v518_v36  ;;  %522 = vst.msk [vmem:[#allocation9 + $0x6] sm:$0x3] %vm44_vm0, %v518_v36 }
 0xb49   :  { %v523_v37 = vld [vmem:[#allocation2] sm:$0x3] }
 0xb4a   :  { %1122 = vmatmul.mubr.msk.f32.vlgmr.msra.gmra.mrb[4].mxu0 %vm54_vm2, %v523_v37 }
 0xb4b   :  { %1195 = vmatpush3.bf16.msra.mxu0 %v1417_v5  ;;  %1143 = vmatprep.mubr.msk.f32.mxu0 %vm1361_vm1, %v1360_v1  ;;  %v610_v49 = vpop.permute.xlu1 %609 }
 0xb4c   :  { %1196 = vmatprep.subr.bf16.mxu0 %v1359_v0 }
 0xb4f   :  { %1198 = vmatpush3.bf16.msra.mxu0 %v1420_v7 }
 0xc1d   :  { %v596_v39 = vpop.f32.mrb[4].mxu0 }
 0xc1e   :  { %v600_v40 = vadd.f32 %v596_v39, %v526_v38  ;;  %v1123_v41 = vpop.f32.mrb[5].mxu0 }
 0xc20   :  { %1249 = vtanh.f32 %v600_v40  ;;  %v1022_v43 = vmul.f32 -1.442695, %v600_v40  ;;  %v880_v40 = vld [vmem:[#allocation4 + $0xe] sm:$0x3] }
 0xc22   :  { %1251 = vpow2.f32 %v1022_v43 }
 0xc2a   :  { %v1250_v42 = vpop.eup %1249 }
 0xc2b   :  { %614 = vrot.lane.b32.xlu0 %v1250_v42, %s1362_s1 }
 0xc2c   :  { %v1252_v44 = vpop.eup %1251 }
 0xc2d   :  { %v604_v45 = vadd.f32 1.0, %v1252_v44 }
 0xc2f   :  { %1253 = vrcp.f32 %v604_v45 }
 0xc39   :  { %v1254_v46 = vpop.eup %1253 }
 0xc3a   :  { %v612_v50 = vmul.f32 %v1254_v46, %v610_v49 }
 0xc9d   :  { %v615_v47 = vpop.permute.xlu0 %614 }
 0xc9e   :  { %v617_v48 = vmul.f32 %v1254_v46, %v615_v47 }
 0xca0   :  { %619 = vrot.lane.b32.xlu0 %v617_v48, %s1354_s19 }
 0xd12   :  { %v620_v51 = vpop.permute.xlu0 %619 }
 0xd13   :  { %v622_v52 = vadd.f32 %v620_v51, %v612_v50 }
 0xd15   :  { %1255 = vtanh.f32 %v622_v52 }
 0xd1f   :  { %v1256_v53 = vpop.eup %1255 }
 0xd20   :  { %625 = vrot.lane.b32.xlu1 %v1256_v53, %s1362_s1 }
 0xd24   :  { %630 = vrot.lane.b32.xlu1 %v622_v52, %s1363_s8 }
 0xd92   :  { %v626_v54 = vpop.permute.xlu1 %625 }
 0xd93   :  { %v628_v55 = vmul.f32 %v1254_v46, %v626_v54 }
 0xd95   :  { %635 = vrot.lane.b32.xlu0 %v628_v55, %s1354_s19 }
 0xd96   :  { %v631_v56 = vpop.permute.xlu1 %630 }
 0xd97   :  { %633 = vst.msk [vmem:[#allocation3] sm:$0x3] %vm44_vm0, %v631_v56 }
 0xd9e   :  { %v642_v57 = vld [vmem:[#allocation3] sm:$0x3] }
 0xd9f   :  { %727 = vrot.lane.b32.xlu1 %v642_v57, %s1354_s19 }
 0xe07   :  { %v636_v58 = vpop.permute.xlu0 %635 }
 0xe08   :  { %638 = vst.msk [vmem:[#allocation2] sm:$0x3] %vm44_vm0, %v636_v58  ;;  %640 = vst.msk [vmem:[#allocation9 + $0x8] sm:$0x3] %vm44_vm0, %v636_v58 }
 0xe0f   :  { %v641_v59 = vld [vmem:[#allocation2] sm:$0x3] }
 0xe10   :  { %1133 = vmatmul.mubr.msk.f32.vlgmr.msra.gmra.mrb[4].mxu1 %vm54_vm2, %v641_v59 }
 0xe11   :  { %1201 = vmatpush3.bf16.msra.mxu1 %v1417_v5  ;;  %1154 = vmatprep.mubr.msk.f32.mxu1 %vm1361_vm1, %v1360_v1 }
 0xe12   :  { %1202 = vmatprep.subr.bf16.mxu1 %v1359_v0  ;;  %v728_v0 = vpop.permute.xlu1 %727 }
 0xe15   :  { %1204 = vmatpush3.bf16.msra.mxu1 %v1420_v7 }
 0xee3   :  { %v714_v61 = vpop.f32.mrb[4].mxu1 }
 0xee4   :  { %v718_v62 = vadd.f32 %v714_v61, %v644_v60  ;;  %v1134_v63 = vpop.f32.mrb[5].mxu1 }
 0xee6   :  { %1257 = vtanh.f32 %v718_v62  ;;  %v1024_v3 = vmul.f32 -1.442695, %v718_v62 }
 0xee8   :  { %1259 = vpow2.f32 %v1024_v3 }
 0xef0   :  { %v1258_v2 = vpop.eup %1257 }
 0xef1   :  { %732 = vrot.lane.b32.xlu0 %v1258_v2, %s1362_s1 }
 0xef2   :  { %v1260_v4 = vpop.eup %1259 }
 0xef3   :  { %v722_v6 = vadd.f32 1.0, %v1260_v4 }
 0xef5   :  { %1261 = vrcp.f32 %v722_v6 }
 0xeff   :  { %v1262_v5 = vpop.eup %1261 }
 0xf00   :  { %v730_v7 = vmul.f32 %v1262_v5, %v728_v0 }
 0xf63   :  { %v733_v8 = vpop.permute.xlu0 %732 }
 0xf64   :  { %v735_v1 = vmul.f32 %v1262_v5, %v733_v8 }
 0xf66   :  { %737 = vrot.lane.b32.xlu0 %v735_v1, %s1354_s19 }
 0xfd8   :  { %v738_v9 = vpop.permute.xlu0 %737 }
 0xfd9   :  { %v740_v10 = vadd.f32 %v738_v9, %v730_v7 }
 0xfdb   :  { %1263 = vtanh.f32 %v740_v10 }
 0xfe5   :  { %v1264_v11 = vpop.eup %1263 }
 0xfe6   :  { %743 = vrot.lane.b32.xlu1 %v1264_v11, %s1362_s1 }
 0xfea   :  { %748 = vrot.lane.b32.xlu1 %v740_v10, %s1363_s8 }
0x1058   :  { %v744_v12 = vpop.permute.xlu1 %743 }
0x1059   :  { %v746_v13 = vmul.f32 %v1262_v5, %v744_v12 }
0x105b   :  { %753 = vrot.lane.b32.xlu0 %v746_v13, %s1354_s19 }
0x105c   :  { %v749_v14 = vpop.permute.xlu1 %748 }
0x105d   :  { %751 = vst.msk [vmem:[#allocation3] sm:$0x3] %vm44_vm0, %v749_v14 }
0x1064   :  { %v760_v15 = vld [vmem:[#allocation3] sm:$0x3] }
0x1065   :  { %845 = vrot.lane.b32.xlu1 %v760_v15, %s1354_s19 }
0x10cd   :  { %v754_v16 = vpop.permute.xlu0 %753 }
0x10ce   :  { %756 = vst.msk [vmem:[#allocation2] sm:$0x3] %vm44_vm0, %v754_v16  ;;  %758 = vst.msk [vmem:[#allocation9 + $0xa] sm:$0x3] %vm44_vm0, %v754_v16 }
0x10d5   :  { %v759_v17 = vld [vmem:[#allocation2] sm:$0x3] }
0x10d6   :  { %1144 = vmatmul.mubr.msk.f32.vlgmr.msra.gmra.mrb[6].mxu0 %vm54_vm2, %v759_v17 }
0x10d7   :  { %v846_v29 = vpop.permute.xlu1 %845 }
0x11a9   :  { %v832_v19 = vpop.f32.mrb[6].mxu0 }
0x11aa   :  { %v836_v20 = vadd.f32 %v832_v19, %v762_v18  ;;  %v1145_v21 = vpop.f32.mrb[7].mxu0 }
0x11ac   :  { %1265 = vtanh.f32 %v836_v20  ;;  %v1026_v23 = vmul.f32 -1.442695, %v836_v20 }
0x11ae   :  { %1267 = vpow2.f32 %v1026_v23 }
0x11b6   :  { %v1266_v22 = vpop.eup %1265 }
0x11b7   :  { %850 = vrot.lane.b32.xlu0 %v1266_v22, %s1362_s1 }
0x11b8   :  { %v1268_v24 = vpop.eup %1267 }
0x11b9   :  { %v840_v25 = vadd.f32 1.0, %v1268_v24 }
0x11bb   :  { %1269 = vrcp.f32 %v840_v25 }
0x11c5   :  { %v1270_v26 = vpop.eup %1269 }
0x11c6   :  { %v848_v30 = vmul.f32 %v1270_v26, %v846_v29 }
0x1229   :  { %v851_v27 = vpop.permute.xlu0 %850 }
0x122a   :  { %v853_v28 = vmul.f32 %v1270_v26, %v851_v27 }
0x122c   :  { %855 = vrot.lane.b32.xlu0 %v853_v28, %s1354_s19 }
0x129e   :  { %v856_v31 = vpop.permute.xlu0 %855 }
0x129f   :  { %v858_v32 = vadd.f32 %v856_v31, %v848_v30 }
0x12a1   :  { %1271 = vtanh.f32 %v858_v32 }
0x12ab   :  { %v1272_v33 = vpop.eup %1271 }
0x12ac   :  { %861 = vrot.lane.b32.xlu1 %v1272_v33, %s1362_s1 }
0x12b0   :  { %866 = vrot.lane.b32.xlu1 %v858_v32, %s1363_s8 }
0x131e   :  { %v862_v34 = vpop.permute.xlu1 %861 }
0x131f   :  { %v864_v35 = vmul.f32 %v1270_v26, %v862_v34 }
0x1321   :  { %871 = vrot.lane.b32.xlu0 %v864_v35, %s1354_s19 }
0x1322   :  { %v867_v36 = vpop.permute.xlu1 %866 }
0x1323   :  { %869 = vst.msk [vmem:[#allocation3] sm:$0x3] %vm44_vm0, %v867_v36 }
0x132a   :  { %v878_v37 = vld [vmem:[#allocation3] sm:$0x3] }
0x132b   :  { %963 = vrot.lane.b32.xlu1 %v878_v37, %s1354_s19 }
0x1393   :  { %v872_v38 = vpop.permute.xlu0 %871 }
0x1394   :  { %874 = vst.msk [vmem:[#allocation2] sm:$0x3] %vm44_vm0, %v872_v38  ;;  %876 = vst.msk [vmem:[#allocation9 + $0xc] sm:$0x3] %vm44_vm0, %v872_v38 }
0x139b   :  { %v877_v39 = vld [vmem:[#allocation2] sm:$0x3] }
0x139c   :  { %1155 = vmatmul.mubr.msk.f32.vlgmr.msra.gmra.mrb[6].mxu1 %vm54_vm2, %v877_v39 }
0x139d   :  { %v964_v51 = vpop.permute.xlu1 %963 }
0x146f   :  { %v950_v41 = vpop.f32.mrb[6].mxu1 }
0x1470   :  { %v954_v42 = vadd.f32 %v950_v41, %v880_v40  ;;  %v1156_v43 = vpop.f32.mrb[7].mxu1 }
0x1472   :  { %1273 = vtanh.f32 %v954_v42  ;;  %v1028_v45 = vmul.f32 -1.442695, %v954_v42 }
0x1474   :  { %1275 = vpow2.f32 %v1028_v45 }
0x147c   :  { %v1274_v44 = vpop.eup %1273 }
0x147d   :  { %968 = vrot.lane.b32.xlu0 %v1274_v44, %s1362_s1 }
0x147e   :  { %v1276_v46 = vpop.eup %1275 }
0x147f   :  { %v958_v47 = vadd.f32 1.0, %v1276_v46 }
0x1481   :  { %1277 = vrcp.f32 %v958_v47 }
0x148b   :  { %v1278_v48 = vpop.eup %1277 }
0x148c   :  { %v966_v52 = vmul.f32 %v1278_v48, %v964_v51 }
0x14ef   :  { %v969_v49 = vpop.permute.xlu0 %968 }
0x14f0   :  { %v971_v50 = vmul.f32 %v1278_v48, %v969_v49 }
0x14f2   :  { %973 = vrot.lane.b32.xlu0 %v971_v50, %s1354_s19 }
0x1564   :  { %v974_v53 = vpop.permute.xlu0 %973 }
0x1565   :  { %v976_v54 = vadd.f32 %v974_v53, %v966_v52 }
0x1567   :  { %1279 = vtanh.f32 %v976_v54 }
0x1571   :  { %v1280_v55 = vpop.eup %1279 }
0x1572   :  { %979 = vrot.lane.b32.xlu1 %v1280_v55, %s1362_s1 }
0x1576   :  { %984 = vrot.lane.b32.xlu1 %v976_v54, %s1363_s8 }
0x15e4   :  { %v980_v56 = vpop.permute.xlu1 %979 }
0x15e5   :  { %v982_v57 = vmul.f32 %v1278_v48, %v980_v56 }
0x15e7   :  { %989 = vrot.lane.b32.xlu0 %v982_v57, %s1354_s19 }
0x15e8   :  { %v985_v58 = vpop.permute.xlu1 %984 }
0x15e9   :  { %987 = vst.msk [vmem:[#allocation3] sm:$0x3] %vm44_vm0, %v985_v58 }
0x1659   :  { %v990_v59 = vpop.permute.xlu0 %989 }
0x165a   :  { %992 = vst.msk [vmem:[#allocation2] sm:$0x3] %vm44_vm0, %v990_v59  ;;  %994 = vst.msk [vmem:[#allocation9 + $0xe] sm:$0x3] %vm44_vm0, %v990_v59 }
0x165b   :  { %1336 = shalt.err (!%p1333_p6)
}
0x165c   :  { %s1337_s14 = scalar_lea.hbm %s1560_s2, 256 }
0x165d   :  { %p1338_p7 = scmp.ne.s32.totalorder %s1560_s2, %s1337_s14  ;;  %p1341_p8 = scmp.lt.u32.totalorder %s1337_s14, %s1560_s2 }
0x165f   :  { %p1343_p9 = pnand %p1341_p8, %p1338_p7 }
0x1661   :  { %1346 = shalt.err (!%p1343_p9)
}
0x1662   :  { %1006 = dma.vmem_to_hbm [thread:$0]  %s1001_s10, 256, %s1560_s2, [#allocation6], %s1354_s19, %s1354_s19, %s1355_s20  }
0x1663   :  { %1351 = dma.done.wait [#allocation6], 256  }
0x1664   :  { %1352 = vsyncadd [#allocation6], 4294967040 }
0x1665   :  { %1010 = vsyncpa [#allocation5], 1 }
0x1666   :  { %1011 = vsyncpa [#allocation8], 1 }
0x1667   :  { %1012 = vsyncpa [#allocation6], 1 }

</bundles_post_ra>
